<compile_context>
chip_gen: v5e
topology: v5e:2x2
jax: 0.10.0
libtpu: 0.0.40
codegen_flags: <defaults>
</compile_context>

<pallas_src>
import jax
import jax.numpy as jnp
from jax.experimental import pallas as pl
from jax.experimental.pallas import tpu as pltpu  # noqa: F401

# Scaled-down but structurally faithful dimensions.
VOCAB = 100          # output_size (len(summary_field.vocab)) -- synthetic vocab
VOCAB_PAD = 128      # lane-dense padded vocab width for the fc output
EMBED = 64           # embedding_dim
HIDDEN = 32          # hidden_dim
NUM_HEADS = 8        # config['num_heads']
HEAD_DIM = HIDDEN // NUM_HEADS
NUM_LAYERS = 1
SUBLANE = 8          # f32 sublane count -> minimum batch tile


def _mm_t(a, b):
    """a @ b.T with f32 accumulation on the MXU (avoids explicit transposes)."""
    return jax.lax.dot_general(a, b, (((1,), (1,)), ((), ())),
                               preferred_element_type=jnp.float32)


def decoder_step_kernel(emb_ref, h0_ref, c0_ref, enc_ref, seg_ref,
                        w_in_ref, b_in_ref, w_o_ref, b_o_ref,
                        w_lstm_ref, b_lstm_ref, w_fc_ref, b_fc_ref,
                        pred_ref, state_ref):
    B = emb_ref.shape[0]                       # padded batch (multiple of 8)
    H = HIDDEN
    S = enc_ref.shape[0] // B                  # encoder length

    emb = emb_ref[...]                         # (B, E)
    h0 = h0_ref[...]                           # (B, H)
    c0 = c0_ref[...]                           # (B, H)
    enc2 = enc_ref[...]                        # (B*S, H) flattened encoder outputs
    seg = seg_ref[...]                         # (H, NH) head-segment one-hot

    # ---- Multi-head attention (all rows, all heads at once) ----
    # 1/sqrt(head_dim) is folded into w_in[0:H] / b_in[0] at prep time.
    q = _mm_t(h0, w_in_ref[0:H, :]) + b_in_ref[0:1, :]            # (B, H)
    k = _mm_t(enc2, w_in_ref[H:2 * H, :]) + b_in_ref[1:2, :]      # (B*S, H)
    v = _mm_t(enc2, w_in_ref[2 * H:3 * H, :]) + b_in_ref[2:3, :]  # (B*S, H)
    k3 = k.reshape(B, S, H)                                       # (B, S, H)
    v3 = v.reshape(B, S, H)                                       # (B, S, H)

    # Per-head scores via head-segment one-hot matmul (no per-head Python loop).
    qk = q[:, None, :] * k3                                       # (B, S, H)
    scores = jnp.dot(qk.reshape(B * S, H), seg,
                     preferred_element_type=jnp.float32)          # (B*S, NH)
    scores = scores.reshape(B, S, NUM_HEADS)
    m = jnp.max(scores, axis=1, keepdims=True)                    # (B, 1, NH)
    p = jnp.exp(scores - m)
    l = jnp.sum(p, axis=1, keepdims=True)                         # (B, 1, NH)
    p = p / l                                                     # exact softmax (S=8)

    # Broadcast per-head probs back to per-channel, weighted sum over S.
    p_full = _mm_t(p.reshape(B * S, NUM_HEADS), seg)              # (B*S, H)
    ctx = jnp.sum(p_full.reshape(B, S, H) * v3, axis=1)           # (B, H)
    attn_out = _mm_t(ctx, w_o_ref[...]) + b_o_ref[...]            # (B, H)

    # ---- LSTM single step: fused [W_ih | W_hh] 128x128 matmul ----
    rnn_in = jnp.concatenate([emb, attn_out, h0], axis=-1)        # (B, E+2H) = (B,128)
    gates = _mm_t(rnn_in, w_lstm_ref[...]) + b_lstm_ref[...]      # (B, 4H)
    i_g = jax.nn.sigmoid(gates[:, 0 * H:1 * H])
    f_g = jax.nn.sigmoid(gates[:, 1 * H:2 * H])
    g_g = jnp.tanh(gates[:, 2 * H:3 * H])
    o_g = jax.nn.sigmoid(gates[:, 3 * H:4 * H])
    c_new = f_g * c0 + i_g * g_g
    h_new = o_g * jnp.tanh(c_new)

    # ---- fc([h_new ; context]) against the lane-padded vocab weight ----
    fc_in = jnp.concatenate([h_new, attn_out], axis=-1)           # (B, 2H)
    pred_ref[...] = _mm_t(fc_in, w_fc_ref[...]) + b_fc_ref[...]   # (B, 128)

    # Lane-dense 128-wide state pack: [h(32) | c(32) | ctx(32) | pad(32)]
    state_ref[...] = jnp.concatenate(
        [h_new, c_new, attn_out, jnp.zeros_like(h_new)], axis=-1)


def init_params(key):
    """Deterministic synthetic parameters with nn.Module __init__ shapes."""
    ks = jax.random.split(key, 10)

    def rnd(k, shape, scale=0.1):
        return (scale * jax.random.normal(k, shape)).astype(jnp.float32)

    return dict(
        embedding=rnd(ks[0], (VOCAB, EMBED)),                 # nn.Embedding
        in_proj_weight=rnd(ks[1], (3 * HIDDEN, HIDDEN)),      # nn.MultiheadAttention
        in_proj_bias=rnd(ks[2], (3 * HIDDEN,)),
        out_proj_weight=rnd(ks[3], (HIDDEN, HIDDEN)),
        out_proj_bias=rnd(ks[4], (1, HIDDEN)),
        w_ih=rnd(ks[5], (4 * HIDDEN, EMBED + HIDDEN)),        # nn.LSTM (1 layer)
        b_ih=rnd(ks[6], (1, 4 * HIDDEN)),
        w_hh=rnd(ks[7], (4 * HIDDEN, HIDDEN)),
        b_hh=rnd(ks[8], (1, 4 * HIDDEN)),
        w_fc=rnd(ks[9], (VOCAB, 2 * HIDDEN)),                 # nn.Linear
        b_fc=jnp.zeros((1, VOCAB), jnp.float32),
    )


def prepare_params(params):
    """One-time parameter fusion/padding, hoisted off the per-step path."""
    H = HIDDEN
    scale = 1.0 / (HEAD_DIM ** 0.5)
    w_in = params['in_proj_weight']
    w_in = jnp.concatenate([w_in[0:H] * scale, w_in[H:]], axis=0)          # (3H, H)
    b_in = params['in_proj_bias'].reshape(3, H)
    b_in = jnp.concatenate([b_in[0:1] * scale, b_in[1:]], axis=0)          # (3, H)
    w_lstm = jnp.concatenate([params['w_ih'], params['w_hh']], axis=1)     # (4H, E+2H)=(128,128)
    b_lstm = params['b_ih'] + params['b_hh']                               # (1, 4H)
    w_fc = jnp.pad(params['w_fc'], ((0, VOCAB_PAD - VOCAB), (0, 0)))       # (128, 2H)
    b_fc = jnp.pad(params['b_fc'], ((0, 0), (0, VOCAB_PAD - VOCAB)))       # (1, 128)
    # Head-segment one-hot: seg[d, n] = 1 iff channel d belongs to head n.
    d_idx = jax.lax.broadcasted_iota(jnp.int32, (H, NUM_HEADS), 0)
    n_idx = jax.lax.broadcasted_iota(jnp.int32, (H, NUM_HEADS), 1)
    seg = (d_idx // HEAD_DIM == n_idx).astype(jnp.float32)                 # (H, NH)
    # TODO(synk): at real vocab sizes (10k), pad/tile the fc N dimension in
    # multiples of 256 and cast matmul operands to bf16 on v6e/v7x.
    return dict(embedding=params['embedding'], w_in=w_in, b_in=b_in,
                w_o=params['out_proj_weight'], b_o=params['out_proj_bias'],
                w_lstm=w_lstm, b_lstm=b_lstm, w_fc=w_fc, b_fc=b_fc, seg=seg)


@jax.jit
def decoder_forward(prepped, input_ids, hidden, cell, encoder_outputs):
    """input_ids (B,), hidden/cell (1,B,H), encoder_outputs (B,S,H)."""
    B, S, _ = encoder_outputs.shape
    Bp = max(SUBLANE, ((B + SUBLANE - 1) // SUBLANE) * SUBLANE)   # sublane-filling rows
    # TODO(synk): for full-sequence generation, move the decode loop inside ONE
    # pallas_call (grid over time, weight index_maps -> (0,0) so they stay
    # VMEM-resident, h/c in VMEM scratch, input_ids gathered in-kernel via
    # PrefetchScalarGridSpec) to eliminate per-step launch + weight re-DMA.
    # TODO(synk): for large B, tile rows in 128 (v5e) / 256 (v6e,v7x) blocks over
    # a "parallel" grid axis (shards across v7x's 2 TensorCores).

    # Per-step glue: only the embedding gather + row padding of dynamic tensors.
    embedded = jnp.take(prepped['embedding'], input_ids, axis=0)   # (B, E)

    def pad_rows(x):
        return jnp.pad(x, [(0, Bp - x.shape[0])] + [(0, 0)] * (x.ndim - 1))

    enc_flat = pad_rows(encoder_outputs).reshape(Bp * S, HIDDEN)

    pred, state = pl.pallas_call(
        decoder_step_kernel,
        out_shape=(jax.ShapeDtypeStruct((Bp, VOCAB_PAD), jnp.float32),
                   jax.ShapeDtypeStruct((Bp, 4 * HIDDEN), jnp.float32)),
    )(pad_rows(embedded), pad_rows(hidden[0]), pad_rows(cell[0]), enc_flat,
      prepped['seg'], prepped['w_in'], prepped['b_in'],
      prepped['w_o'], prepped['b_o'],
      prepped['w_lstm'], prepped['b_lstm'],
      prepped['w_fc'], prepped['b_fc'])

    h_new = state[:B, 0:HIDDEN]
    c_new = state[:B, HIDDEN:2 * HIDDEN]
    ctx = state[:B, 2 * HIDDEN:3 * HIDDEN]
    # Match the reference return layout:
    # prediction (B,V), hidden.permute(1,0,2) -> (B,1,H), cell (1,B,H), attn (B,1,H)
    return (pred[:B, :VOCAB],
            h_new.reshape(B, 1, HIDDEN),
            c_new.reshape(1, B, HIDDEN),
            ctx.reshape(B, 1, HIDDEN))


def decoder_forward_ref(params, input_ids, hidden, cell, encoder_outputs):
    """Pure-JAX reference with identical semantics (for validation)."""
    B, S, _ = encoder_outputs.shape
    embedded = params['embedding'][input_ids]
    h0, c0 = hidden[0], cell[0]
    wq, wk, wv = jnp.split(params['in_proj_weight'], 3, axis=0)
    bq, bk, bv = jnp.split(params['in_proj_bias'], 3)
    q = h0 @ wq.T + bq
    k = encoder_outputs @ wk.T + bk
    v = encoder_outputs @ wv.T + bv
    qh = q.reshape(B, NUM_HEADS, HEAD_DIM)
    kh = k.reshape(B, S, NUM_HEADS, HEAD_DIM)
    vh = v.reshape(B, S, NUM_HEADS, HEAD_DIM)
    scores = jnp.einsum('bnd,bsnd->bns', qh, kh) / (HEAD_DIM ** 0.5)
    probs = jax.nn.softmax(scores, axis=-1)
    ctx = jnp.einsum('bns,bsnd->bnd', probs, vh).reshape(B, HIDDEN)
    attn_out = ctx @ params['out_proj_weight'].T + params['out_proj_bias'][0]
    rnn_in = jnp.concatenate([embedded, attn_out], axis=-1)
    gates = (rnn_in @ params['w_ih'].T + params['b_ih'][0]
             + h0 @ params['w_hh'].T + params['b_hh'][0])
    i_g, f_g, g_g, o_g = jnp.split(gates, 4, axis=-1)
    c_new = jax.nn.sigmoid(f_g) * c0 + jax.nn.sigmoid(i_g) * jnp.tanh(g_g)
    h_new = jax.nn.sigmoid(o_g) * jnp.tanh(c_new)
    out = jnp.concatenate([h_new, attn_out], axis=-1)
    pred = out @ params['w_fc'].T + params['b_fc'][0]
    return (pred, h_new.reshape(B, 1, HIDDEN), c_new.reshape(1, B, HIDDEN),
            attn_out.reshape(B, 1, HIDDEN))


if __name__ == "__main__":
    B, S = 2, 8
    key = jax.random.PRNGKey(0)
    kp, k1, k2, k3, k4 = jax.random.split(key, 5)
    params = init_params(kp)
    prepped = prepare_params(params)          # one-time fusion/padding (not per step)

    input_ids = jax.random.randint(k1, (B,), 0, VOCAB, dtype=jnp.int32)
    hidden = 0.1 * jax.random.normal(k2, (NUM_LAYERS, B, HIDDEN), dtype=jnp.float32)
    cell = 0.1 * jax.random.normal(k3, (NUM_LAYERS, B, HIDDEN), dtype=jnp.float32)
    encoder_outputs = 0.1 * jax.random.normal(k4, (B, S, HIDDEN), dtype=jnp.float32)

    outs = decoder_forward(prepped, input_ids, hidden, cell, encoder_outputs)
    outs = jax.block_until_ready(outs)

    refs = decoder_forward_ref(params, input_ids, hidden, cell, encoder_outputs)
    for o, r in zip(outs, refs):
        assert o.shape == r.shape, (o.shape, r.shape)
        assert jnp.allclose(o, r, atol=1e-4, rtol=1e-4), float(jnp.max(jnp.abs(o - r)))

    print("KERNEL_OK")
</pallas_src>

<mosaic_0001>
module attributes {stable_mosaic.version = 11 : i64} {
  func.func @decoder_step_kernel(%arg0: memref<8x64xf32, #tpu.memory_space<vmem>>, %arg1: memref<8x32xf32, #tpu.memory_space<vmem>>, %arg2: memref<8x32xf32, #tpu.memory_space<vmem>>, %arg3: memref<64x32xf32, #tpu.memory_space<vmem>>, %arg4: memref<32x8xf32, #tpu.memory_space<vmem>>, %arg5: memref<96x32xf32, #tpu.memory_space<vmem>>, %arg6: memref<3x32xf32, #tpu.memory_space<vmem>>, %arg7: memref<32x32xf32, #tpu.memory_space<vmem>>, %arg8: memref<1x32xf32, #tpu.memory_space<vmem>>, %arg9: memref<128x128xf32, #tpu.memory_space<vmem>>, %arg10: memref<1x128xf32, #tpu.memory_space<vmem>>, %arg11: memref<128x64xf32, #tpu.memory_space<vmem>>, %arg12: memref<1x128xf32, #tpu.memory_space<vmem>>, %arg13: memref<8x128xf32, #tpu.memory_space<vmem>>, %arg14: memref<8x128xf32, #tpu.memory_space<vmem>>) attributes {dimension_semantics = [], scalar_prefetch = 0 : i64, scratch_operands = 0 : i64, tpu.core_type = #tpu.core_type<tc>} {
    %c0 = arith.constant 0 : index
    %c0_0 = arith.constant 0 : index
    %0 = vector.load %arg0[%c0, %c0_0] : memref<8x64xf32, #tpu.memory_space<vmem>>, vector<8x64xf32>
    %c0_1 = arith.constant 0 : index
    %c0_2 = arith.constant 0 : index
    %1 = vector.load %arg1[%c0_1, %c0_2] : memref<8x32xf32, #tpu.memory_space<vmem>>, vector<8x32xf32>
    %c0_3 = arith.constant 0 : index
    %c0_4 = arith.constant 0 : index
    %2 = vector.load %arg2[%c0_3, %c0_4] : memref<8x32xf32, #tpu.memory_space<vmem>>, vector<8x32xf32>
    %c0_5 = arith.constant 0 : index
    %c0_6 = arith.constant 0 : index
    %3 = vector.load %arg3[%c0_5, %c0_6] : memref<64x32xf32, #tpu.memory_space<vmem>>, vector<64x32xf32>
    %c0_7 = arith.constant 0 : index
    %c0_8 = arith.constant 0 : index
    %4 = vector.load %arg4[%c0_7, %c0_8] : memref<32x8xf32, #tpu.memory_space<vmem>>, vector<32x8xf32>
    %c0_9 = arith.constant 0 : index
    %c0_10 = arith.constant 0 : index
    %5 = vector.load %arg5[%c0_9, %c0_10] : memref<96x32xf32, #tpu.memory_space<vmem>>, vector<32x32xf32>
    %cst = arith.constant dense<0.000000e+00> : vector<8x32xf32>
    %6 = tpu.matmul %1, %5, %cst {dimension_numbers = #tpu.dot_dimension_numbers<[1], [1], [0], [0], [0, 0, 1, 0], [], []>} : vector<8x32xf32>, vector<32x32xf32>, vector<8x32xf32> -> vector<8x32xf32>
    %c0_11 = arith.constant 0 : index
    %c0_12 = arith.constant 0 : index
    %7 = vector.load %arg6[%c0_11, %c0_12] : memref<3x32xf32, #tpu.memory_space<vmem>>, vector<1x32xf32>
    %8 = vector.broadcast %7 : vector<1x32xf32> to vector<8x32xf32>
    %9 = arith.addf %6, %8 : vector<8x32xf32>
    %c32 = arith.constant 32 : index
    %c0_13 = arith.constant 0 : index
    %10 = vector.load %arg5[%c32, %c0_13] : memref<96x32xf32, #tpu.memory_space<vmem>>, vector<32x32xf32>
    %cst_14 = arith.constant dense<0.000000e+00> : vector<64x32xf32>
    %11 = tpu.matmul %3, %10, %cst_14 {dimension_numbers = #tpu.dot_dimension_numbers<[1], [1], [0], [0], [0, 0, 1, 0], [], []>} : vector<64x32xf32>, vector<32x32xf32>, vector<64x32xf32> -> vector<64x32xf32>
    %c1 = arith.constant 1 : index
    %c0_15 = arith.constant 0 : index
    %12 = vector.load %arg6[%c1, %c0_15] : memref<3x32xf32, #tpu.memory_space<vmem>>, vector<1x32xf32>
    %13 = vector.broadcast %12 : vector<1x32xf32> to vector<64x32xf32>
    %14 = arith.addf %11, %13 : vector<64x32xf32>
    %c64 = arith.constant 64 : index
    %c0_16 = arith.constant 0 : index
    %15 = vector.load %arg5[%c64, %c0_16] : memref<96x32xf32, #tpu.memory_space<vmem>>, vector<32x32xf32>
    %cst_17 = arith.constant dense<0.000000e+00> : vector<64x32xf32>
    %16 = tpu.matmul %3, %15, %cst_17 {dimension_numbers = #tpu.dot_dimension_numbers<[1], [1], [0], [0], [0, 0, 1, 0], [], []>} : vector<64x32xf32>, vector<32x32xf32>, vector<64x32xf32> -> vector<64x32xf32>
    %c2 = arith.constant 2 : index
    %c0_18 = arith.constant 0 : index
    %17 = vector.load %arg6[%c2, %c0_18] : memref<3x32xf32, #tpu.memory_space<vmem>>, vector<1x32xf32>
    %18 = vector.broadcast %17 : vector<1x32xf32> to vector<64x32xf32>
    %19 = arith.addf %16, %18 : vector<64x32xf32>
    %20 = vector.shape_cast %14 : vector<64x32xf32> to vector<8x8x32xf32>
    %21 = vector.shape_cast %19 : vector<64x32xf32> to vector<8x8x32xf32>
    %22 = vector.shape_cast %9 : vector<8x32xf32> to vector<8x1x32xf32>
    %23 = vector.broadcast %22 : vector<8x1x32xf32> to vector<8x8x32xf32>
    %24 = arith.mulf %23, %20 : vector<8x8x32xf32>
    %25 = vector.shape_cast %24 : vector<8x8x32xf32> to vector<64x32xf32>
    %cst_19 = arith.constant dense<0.000000e+00> : vector<64x8xf32>
    %26 = tpu.matmul %25, %4, %cst_19 {dimension_numbers = #tpu.dot_dimension_numbers<[1], [0], [0], [1], [0, 0, 1, 1], [], []>} : vector<64x32xf32>, vector<32x8xf32>, vector<64x8xf32> -> vector<64x8xf32>
    %27 = vector.shape_cast %26 : vector<64x8xf32> to vector<8x8x8xf32>
    %cst_20 = arith.constant dense<0xFF800000> : vector<8x8xf32>
    %28 = vector.multi_reduction <maximumf>, %27, %cst_20 [1] : vector<8x8x8xf32> to vector<8x8xf32>
    %29 = vector.shape_cast %28 : vector<8x8xf32> to vector<8x1x8xf32>
    %30 = vector.broadcast %29 : vector<8x1x8xf32> to vector<8x8x8xf32>
    %31 = arith.subf %27, %30 : vector<8x8x8xf32>
    %32 = math.exp %31 : vector<8x8x8xf32>
    %cst_21 = arith.constant dense<0.000000e+00> : vector<8x8xf32>
    %33 = vector.multi_reduction <add>, %32, %cst_21 [1] : vector<8x8x8xf32> to vector<8x8xf32>
    %34 = vector.shape_cast %33 : vector<8x8xf32> to vector<8x1x8xf32>
    %35 = vector.broadcast %34 : vector<8x1x8xf32> to vector<8x8x8xf32>
    %36 = arith.divf %32, %35 : vector<8x8x8xf32>
    %37 = vector.shape_cast %36 : vector<8x8x8xf32> to vector<64x8xf32>
    %cst_22 = arith.constant dense<0.000000e+00> : vector<64x32xf32>
    %38 = tpu.matmul %37, %4, %cst_22 {dimension_numbers = #tpu.dot_dimension_numbers<[1], [1], [0], [0], [0, 0, 1, 0], [], []>} : vector<64x8xf32>, vector<32x8xf32>, vector<64x32xf32> -> vector<64x32xf32>
    %39 = vector.shape_cast %38 : vector<64x32xf32> to vector<8x8x32xf32>
    %40 = arith.mulf %39, %21 : vector<8x8x32xf32>
    %cst_23 = arith.constant dense<0.000000e+00> : vector<8x32xf32>
    %41 = vector.multi_reduction <add>, %40, %cst_23 [1] : vector<8x8x32xf32> to vector<8x32xf32>
    %c0_24 = arith.constant 0 : index
    %c0_25 = arith.constant 0 : index
    %42 = vector.load %arg7[%c0_24, %c0_25] : memref<32x32xf32, #tpu.memory_space<vmem>>, vector<32x32xf32>
    %cst_26 = arith.constant dense<0.000000e+00> : vector<8x32xf32>
    %43 = tpu.matmul %41, %42, %cst_26 {dimension_numbers = #tpu.dot_dimension_numbers<[1], [1], [0], [0], [0, 0, 1, 0], [], []>} : vector<8x32xf32>, vector<32x32xf32>, vector<8x32xf32> -> vector<8x32xf32>
    %c0_27 = arith.constant 0 : index
    %c0_28 = arith.constant 0 : index
    %44 = vector.load %arg8[%c0_27, %c0_28] : memref<1x32xf32, #tpu.memory_space<vmem>>, vector<1x32xf32>
    %45 = vector.broadcast %44 : vector<1x32xf32> to vector<8x32xf32>
    %46 = arith.addf %43, %45 : vector<8x32xf32>
    %47 = tpu.concatenate %0, %46, %1 in 1 : vector<8x64xf32>, vector<8x32xf32>, vector<8x32xf32> -> vector<8x128xf32>
    %c0_29 = arith.constant 0 : index
    %c0_30 = arith.constant 0 : index
    %48 = vector.load %arg9[%c0_29, %c0_30] : memref<128x128xf32, #tpu.memory_space<vmem>>, vector<128x128xf32>
    %cst_31 = arith.constant dense<0.000000e+00> : vector<8x128xf32>
    %49 = tpu.matmul %47, %48, %cst_31 {dimension_numbers = #tpu.dot_dimension_numbers<[1], [1], [0], [0], [0, 0, 1, 0], [], []>} : vector<8x128xf32>, vector<128x128xf32>, vector<8x128xf32> -> vector<8x128xf32>
    %c0_32 = arith.constant 0 : index
    %c0_33 = arith.constant 0 : index
    %50 = vector.load %arg10[%c0_32, %c0_33] : memref<1x128xf32, #tpu.memory_space<vmem>>, vector<1x128xf32>
    %51 = vector.broadcast %50 : vector<1x128xf32> to vector<8x128xf32>
    %52 = arith.addf %49, %51 : vector<8x128xf32>
    %53 = vector.extract_strided_slice %52 {offsets = [0, 0], sizes = [8, 32], strides = [1, 1]} : vector<8x128xf32> to vector<8x32xf32>
    %54 = arith.negf %53 : vector<8x32xf32>
    %55 = math.exp %54 : vector<8x32xf32>
    %cst_34 = arith.constant 1.000000e+00 : f32
    %56 = vector.broadcast %cst_34 : f32 to vector<8x32xf32>
    %57 = arith.addf %56, %55 : vector<8x32xf32>
    %58 = arith.divf %56, %57 : vector<8x32xf32>
    %59 = vector.extract_strided_slice %52 {offsets = [0, 32], sizes = [8, 32], strides = [1, 1]} : vector<8x128xf32> to vector<8x32xf32>
    %60 = arith.negf %59 : vector<8x32xf32>
    %61 = math.exp %60 : vector<8x32xf32>
    %cst_35 = arith.constant 1.000000e+00 : f32
    %62 = vector.broadcast %cst_35 : f32 to vector<8x32xf32>
    %63 = arith.addf %62, %61 : vector<8x32xf32>
    %64 = arith.divf %62, %63 : vector<8x32xf32>
    %65 = vector.extract_strided_slice %52 {offsets = [0, 64], sizes = [8, 32], strides = [1, 1]} : vector<8x128xf32> to vector<8x32xf32>
    %66 = math.tanh %65 : vector<8x32xf32>
    %67 = vector.extract_strided_slice %52 {offsets = [0, 96], sizes = [8, 32], strides = [1, 1]} : vector<8x128xf32> to vector<8x32xf32>
    %68 = arith.negf %67 : vector<8x32xf32>
    %69 = math.exp %68 : vector<8x32xf32>
    %cst_36 = arith.constant 1.000000e+00 : f32
    %70 = vector.broadcast %cst_36 : f32 to vector<8x32xf32>
    %71 = arith.addf %70, %69 : vector<8x32xf32>
    %72 = arith.divf %70, %71 : vector<8x32xf32>
    %73 = arith.mulf %64, %2 : vector<8x32xf32>
    %74 = arith.mulf %58, %66 : vector<8x32xf32>
    %75 = arith.addf %73, %74 : vector<8x32xf32>
    %76 = math.tanh %75 : vector<8x32xf32>
    %77 = arith.mulf %72, %76 : vector<8x32xf32>
    %78 = tpu.concatenate %77, %46 in 1 : vector<8x32xf32>, vector<8x32xf32> -> vector<8x64xf32>
    %c0_37 = arith.constant 0 : index
    %c0_38 = arith.constant 0 : index
    %79 = vector.load %arg11[%c0_37, %c0_38] : memref<128x64xf32, #tpu.memory_space<vmem>>, vector<128x64xf32>
    %cst_39 = arith.constant dense<0.000000e+00> : vector<8x128xf32>
    %80 = tpu.matmul %78, %79, %cst_39 {dimension_numbers = #tpu.dot_dimension_numbers<[1], [1], [0], [0], [0, 0, 1, 0], [], []>} : vector<8x64xf32>, vector<128x64xf32>, vector<8x128xf32> -> vector<8x128xf32>
    %c0_40 = arith.constant 0 : index
    %c0_41 = arith.constant 0 : index
    %81 = vector.load %arg12[%c0_40, %c0_41] : memref<1x128xf32, #tpu.memory_space<vmem>>, vector<1x128xf32>
    %82 = vector.broadcast %81 : vector<1x128xf32> to vector<8x128xf32>
    %83 = arith.addf %80, %82 : vector<8x128xf32>
    %c0_42 = arith.constant 0 : index
    %c0_43 = arith.constant 0 : index
    %84 = vector.load %arg13[%c0_42, %c0_43] : memref<8x128xf32, #tpu.memory_space<vmem>>, vector<8x128xf32>
    tpu.vector_store %arg13[%c0_42, %c0_43], %83 {strides = array<i32>} : memref<8x128xf32, #tpu.memory_space<vmem>>, vector<8x128xf32>,
    %cst_44 = arith.constant 0.000000e+00 : f32
    %85 = vector.broadcast %cst_44 : f32 to vector<8x32xf32>
    %86 = tpu.concatenate %77, %75, %46, %85 in 1 : vector<8x32xf32>, vector<8x32xf32>, vector<8x32xf32>, vector<8x32xf32> -> vector<8x128xf32>
    %c0_45 = arith.constant 0 : index
    %c0_46 = arith.constant 0 : index
    %87 = vector.load %arg14[%c0_45, %c0_46] : memref<8x128xf32, #tpu.memory_space<vmem>>, vector<8x128xf32>
    tpu.vector_store %arg14[%c0_45, %c0_46], %86 {strides = array<i32>} : memref<8x128xf32, #tpu.memory_space<vmem>>, vector<8x128xf32>,
    return
  }
}

</mosaic_0001>

<bundles_post_ra>
// kernel: decoder_forward.1
= control target key start
LH: loop header
LB: loop body
LE: loop exit
PB: predicated region body
PF: predicated region fallthrough
CT: control target
= control target key end

     0   :  { %vm67_vm0 = vcmask 261120   ;;  %vm342_vm1 = vcmask 64512   ;;  %s1132_s23 = smov 32   ;;  %s1631_s5 = inlined_call_operand.vmem [shape: f32[96,32], index: 5, kind: input, shape index: {}]   ;;  %s1632_s6 = inlined_call_operand.vmem [shape: f32[3,32], index: 6, kind: input, shape index: {}]   ;;  %s1633_s1 = inlined_call_operand.vmem [shape: f32[8,32], index: 1, kind: input, shape index: {}]   ;;  %s1634_s3 = inlined_call_operand.vmem [shape: f32[64,32], index: 3, kind: input, shape index: {}]   ;;  %s1635_s4 = inlined_call_operand.vmem [shape: f32[32,8], index: 4, kind: input, shape index: {}]   ;;  %s1636_s8 = inlined_call_operand.vmem [shape: f32[1,32], index: 8, kind: input, shape index: {}]   ;;  %s1637_s7 = inlined_call_operand.vmem [shape: f32[32,32], index: 7, kind: input, shape index: {}]   ;;  %s1638_s9 = inlined_call_operand.vmem [shape: f32[128,128], index: 9, kind: input, shape index: {}]   ;;  %s1639_s10 = inlined_call_operand.vmem [shape: f32[1,128], index: 10, kind: input, shape index: {}]   ;;  %s1640_s0 = inlined_call_operand.vmem [shape: f32[8,64], index: 0, kind: input, shape index: {}]   ;;  %s1641_s2 = inlined_call_operand.vmem [shape: f32[8,32], index: 2, kind: input, shape index: {}]   ;;  %s1642_s11 = inlined_call_operand.vmem [shape: f32[128,64], index: 11, kind: input, shape index: {}]   ;;  %s1643_s12 = inlined_call_operand.vmem [shape: f32[1,128], index: 12, kind: input, shape index: {}]   ;;  %s1644_s14 = inlined_call_operand.vmem [shape: f32[8,128], index: 14, kind: output, shape index: {1}]   ;;  %s1645_s13 = inlined_call_operand.vmem [shape: f32[8,128], index: 13, kind: output, shape index: {0}]  }
   0x1   :  { %v64_v0 = vld [vmem:[%s1631_s5 + $0x18] sm:$0xff]  ;;  %v63_v2 = vld [vmem:[%s1631_s5 + $0x10] sm:$0xff]  ;;  %v62_v4 = vld [vmem:[%s1631_s5 + $0x8] sm:$0xff] }
   0x2   :  { %v106_v1 = vld [vmem:[%s1631_s5 + $0x38] sm:$0xff]  ;;  %1008 = vmatpush.xpose.msk.msra.mxu0 %vm67_vm0, %v64_v0  ;;  %v105_v3 = vld [vmem:[%s1631_s5 + $0x30] sm:$0xff]  ;;  %v104_v5 = vld [vmem:[%s1631_s5 + $0x28] sm:$0xff] }
   0x3   :  { %1013 = vmatpush.xpose.msk.msra.mxu1 %vm67_vm0, %v106_v1  ;;  %v61_v6 = vld [vmem:[%s1631_s5] sm:$0xff]  ;;  %v1254_v10 = vld [vmem:[%s1634_s3 + $0x8] sm:$0xff]  ;;  %v1261_v11 = vld [vmem:[%s1634_s3 + $0x10] sm:$0xff] }
   0x4   :  { %v103_v7 = vld [vmem:[%s1631_s5 + $0x20] sm:$0xff]  ;;  %v1268_v12 = vld [vmem:[%s1634_s3 + $0x18] sm:$0xff]  ;;  %v1282_v14 = vld [vmem:[%s1634_s3 + $0x28] sm:$0xff] }
   0x5   :  { %v47_v8 = vld [vmem:[%s1633_s1] sm:$0xff]  ;;  %v1289_v15 = vld [vmem:[%s1634_s3 + $0x30] sm:$0xff]  ;;  %v1296_v16 = vld [vmem:[%s1634_s3 + $0x38] sm:$0xff] }
   0x6   :  { %1009 = vmatpush.xpose.msk.msra.mxu0 %vm67_vm0, %v63_v2  ;;  %v1246_v9 = vld [vmem:[%s1634_s3] sm:$0xff]  ;;  %v60_v17 = vld [vmem:[%s1635_s4 + $0x18] sm:$0xff]  ;;  %v59_v18 = vld [vmem:[%s1635_s4 + $0x10] sm:$0xff] }
   0x7   :  { %1014 = vmatpush.xpose.msk.msra.mxu1 %vm67_vm0, %v105_v3  ;;  %v1275_v13 = vld [vmem:[%s1634_s3 + $0x20] sm:$0xff]  ;;  %313 = vmatpush.msra.mxu3 %v60_v17  ;;  %v58_v19 = vld [vmem:[%s1635_s4 + $0x8] sm:$0xff]  ;;  %v189_v3 = vld [vmem:[%s1631_s5 + $0x58] sm:$0xff]  ;;  %s1130_s3 = smov 64  }
   0x8   :  { %v57_v20 = vld [vmem:[%s1635_s4] sm:$0xff]  ;;  %1025 = vmatpush.xpose.msk.msra.mxu2 %vm67_vm0, %v189_v3 }
   0x9   :  { %314 = vmatpush.msra.mxu3 %v59_v18  ;;  %v1083_v21 = vld [vmem:[%s1632_s6] ss:$0 sm:$0xff]  ;;  %v1084_v22 = vld [vmem:[%s1632_s6 + $0x1] ss:$0 sm:$0xff] }
   0xa   :  { %1010 = vmatpush.xpose.msk.msra.mxu0 %vm67_vm0, %v62_v4 }
   0xb   :  { %1015 = vmatpush.xpose.msk.msra.mxu1 %vm67_vm0, %v104_v5  ;;  %315 = vmatpush.msra.mxu3 %v58_v19 }
   0xd   :  { %316 = vmatpush.msra.mxu3 %v57_v20 }
   0xe   :  { %1011 = vmatpush.xpose.msk.msra.mxu0 %vm67_vm0, %v61_v6  ;;  %v188_v6 = vld [vmem:[%s1631_s5 + $0x50] sm:$0xff] }
   0xf   :  { %1016 = vmatpush.xpose.msk.msra.mxu1 %vm67_vm0, %v103_v7  ;;  %1026 = vmatpush.xpose.msk.msra.mxu2 %vm67_vm0, %v188_v6 }
  0x11   :  { %1012 = vmatmul.msk.f32.vlgmr.msra.gmra.mxu0 %vm67_vm0, %v47_v8 }
  0x12   :  { %1017 = vmatmul.msk.f32.vlgmr.msra.gmra.mxu1 %vm67_vm0, %v1246_v9  ;;  %1045 = vmatpush.xpose.msk.msrb.mxu0 %vm342_vm1, %v60_v17 }
  0x16   :  { %1046 = vmatpush.xpose.msk.msrb.mxu0 %vm342_vm1, %v59_v18 }
  0x1a   :  { %1018 = vmatmul.msk.f32.gmra.mxu1 %vm67_vm0, %v1254_v10  ;;  %1047 = vmatpush.xpose.msk.msrb.mxu0 %vm342_vm1, %v58_v19 }
  0x1e   :  { %1048 = vmatpush.xpose.msk.msrb.mxu0 %vm342_vm1, %v57_v20  ;;  %v187_v20 = vld [vmem:[%s1631_s5 + $0x48] sm:$0xff] }
  0x1f   :  { %1027 = vmatpush.xpose.msk.msra.mxu2 %vm67_vm0, %v187_v20 }
  0x22   :  { %1019 = vmatmul.msk.f32.gmra.mxu1 %vm67_vm0, %v1261_v11 }
  0x2a   :  { %1020 = vmatmul.msk.f32.gmra.mxu1 %vm67_vm0, %v1268_v12 }
  0x32   :  { %1021 = vmatmul.msk.f32.gmra.mxu1 %vm67_vm0, %v1275_v13 }
  0x3a   :  { %1022 = vmatmul.msk.f32.gmra.mxu1 %vm67_vm0, %v1282_v14 }
  0x42   :  { %1023 = vmatmul.msk.f32.gmra.mxu1 %vm67_vm0, %v1289_v15 }
  0x4a   :  { %1024 = vmatmul.msk.f32.gmra.mxu1 %vm67_vm0, %v1296_v16 }
  0x8e   :  { %v100_v23 = vpop.f32.mrf.mxu0 }
  0x8f   :  { %v162_v24 = vpop.f32.mrf.mxu1  ;;  %v101_v25 = vadd.f32 %v1083_v21, %v100_v23 }
  0x90   :  { %v163_v26 = vadd.f32 %v1084_v22, %v162_v24 }
  0x91   :  { %v253_v27 = vperm.slane %v101_v25, 0  ;;  %v246_v29 = vrot.slane %v101_v25, 1  ;;  %v247_v34 = vrot.slane %v101_v25, 2  ;;  %v248_v39 = vrot.slane %v101_v25, 3 }
  0x92   :  { %v249_v44 = vrot.slane %v101_v25, 4  ;;  %v250_v49 = vrot.slane %v101_v25, 5  ;;  %v251_v54 = vrot.slane %v101_v25, 6  ;;  %v252_v59 = vrot.slane %v101_v25, 7  ;;  %v186_v25 = vld [vmem:[%s1631_s5 + $0x40] sm:$0xff] }
  0x93   :  { %v269_v28 = vmul.f32 %v253_v27, %v163_v26  ;;  %v254_v32 = vperm.slane %v246_v29, 0  ;;  %v255_v37 = vperm.slane %v247_v34, 0  ;;  %v256_v42 = vperm.slane %v248_v39, 0  ;;  %1028 = vmatpush.xpose.msk.msra.mxu2 %vm67_vm0, %v186_v25 }
  0x94   :  { %v257_v47 = vperm.slane %v249_v44, 0  ;;  %v258_v52 = vperm.slane %v250_v49, 0  ;;  %v259_v57 = vperm.slane %v251_v54, 0  ;;  %v260_v62 = vperm.slane %v252_v59, 0 }
  0x95   :  { %1037 = vmatmul.msk.f32.vlgmr.msra.gmra.mxu3 %vm67_vm0, %v269_v28 }
  0x96   :  { %1029 = vmatmul.msk.f32.vlgmr.msra.gmra.mxu2 %vm67_vm0, %v1246_v9 }
  0x97   :  { %v165_v30 = vpop.f32.mrf.mxu1 }
  0x98   :  { %v166_v31 = vadd.f32 %v1084_v22, %v165_v30 }
  0x9a   :  { %v270_v33 = vmul.f32 %v254_v32, %v166_v31 }
  0x9d   :  { %1038 = vmatmul.msk.f32.gmra.mxu3 %vm67_vm0, %v270_v33 }
  0x9e   :  { %1030 = vmatmul.msk.f32.gmra.mxu2 %vm67_vm0, %v1254_v10 }
  0x9f   :  { %v168_v35 = vpop.f32.mrf.mxu1 }
  0xa0   :  { %v169_v36 = vadd.f32 %v1084_v22, %v168_v35 }
  0xa2   :  { %v271_v38 = vmul.f32 %v255_v37, %v169_v36 }
  0xa5   :  { %1039 = vmatmul.msk.f32.gmra.mxu3 %vm67_vm0, %v271_v38 }
  0xa6   :  { %1031 = vmatmul.msk.f32.gmra.mxu2 %vm67_vm0, %v1261_v11 }
  0xa7   :  { %v171_v40 = vpop.f32.mrf.mxu1 }
  0xa8   :  { %v172_v41 = vadd.f32 %v1084_v22, %v171_v40 }
  0xaa   :  { %v272_v43 = vmul.f32 %v256_v42, %v172_v41 }
  0xad   :  { %1040 = vmatmul.msk.f32.gmra.mxu3 %vm67_vm0, %v272_v43 }
  0xae   :  { %1032 = vmatmul.msk.f32.gmra.mxu2 %vm67_vm0, %v1268_v12 }
  0xaf   :  { %v174_v45 = vpop.f32.mrf.mxu1 }
  0xb0   :  { %v175_v46 = vadd.f32 %v1084_v22, %v174_v45 }
  0xb2   :  { %v273_v48 = vmul.f32 %v257_v47, %v175_v46 }
  0xb5   :  { %1041 = vmatmul.msk.f32.gmra.mxu3 %vm67_vm0, %v273_v48 }
  0xb6   :  { %1033 = vmatmul.msk.f32.gmra.mxu2 %vm67_vm0, %v1275_v13 }
  0xb7   :  { %v177_v50 = vpop.f32.mrf.mxu1 }
  0xb8   :  { %v178_v51 = vadd.f32 %v1084_v22, %v177_v50 }
  0xba   :  { %v274_v53 = vmul.f32 %v258_v52, %v178_v51 }
  0xbd   :  { %1042 = vmatmul.msk.f32.gmra.mxu3 %vm67_vm0, %v274_v53 }
  0xbe   :  { %1034 = vmatmul.msk.f32.gmra.mxu2 %vm67_vm0, %v1282_v14 }
  0xbf   :  { %v180_v55 = vpop.f32.mrf.mxu1 }
  0xc0   :  { %v181_v56 = vadd.f32 %v1084_v22, %v180_v55 }
  0xc2   :  { %v275_v58 = vmul.f32 %v259_v57, %v181_v56 }
  0xc5   :  { %1043 = vmatmul.msk.f32.gmra.mxu3 %vm67_vm0, %v275_v58 }
  0xc6   :  { %1035 = vmatmul.msk.f32.gmra.mxu2 %vm67_vm0, %v1289_v15 }
  0xc7   :  { %v183_v60 = vpop.f32.mrf.mxu1 }
  0xc8   :  { %v184_v61 = vadd.f32 %v1084_v22, %v183_v60 }
  0xca   :  { %v276_v63 = vmul.f32 %v260_v62, %v184_v61 }
  0xcd   :  { %1044 = vmatmul.msk.f32.gmra.mxu3 %vm67_vm0, %v276_v63 }
  0xce   :  { %1036 = vmatmul.msk.f32.gmra.mxu2 %vm67_vm0, %v1296_v16 }
 0x118   :  { %v318_v0 = vpop.f32.mrf.mxu3 }
 0x119   :  { %v343_v1 = vsel %vm342_vm1, %v318_v0, -inf }
 0x11a   :  { %v344_v2 = vrot.slane %v343_v1, 4 }
 0x11c   :  { %v345_v4 = vmax.f32 %v343_v1, %v344_v2 }
 0x11e   :  { %v346_v5 = vrot.slane %v345_v4, 2 }
 0x120   :  { %v347_v7 = vmax.f32 %v345_v4, %v346_v5  ;;  %v321_v8 = vpop.f32.mrf.mxu3 }
 0x121   :  { %v350_v17 = vsel %vm342_vm1, %v321_v8, -inf }
 0x122   :  { %v348_v18 = vrot.slane %v347_v7, 1  ;;  %v351_v19 = vrot.slane %v350_v17, 4 }
 0x124   :  { %v349_v21 = vmax.f32 %v347_v7, %v348_v18  ;;  %v352_v22 = vmax.f32 %v350_v17, %v351_v19 }
 0x126   :  { %v399_v23 = vsub.f32 %v318_v0, %v349_v21  ;;  %v353_v24 = vrot.slane %v352_v22, 2 }
 0x128   :  { %v407_v26 = vmul.f32 1.442695, %v399_v23  ;;  %v354_v27 = vmax.f32 %v352_v22, %v353_v24  ;;  %v324_v28 = vpop.f32.mrf.mxu3 }
 0x129   :  { %v357_v29 = vsel %vm342_vm1, %v324_v28, -inf }
 0x12a   :  { %1089 = vpow2.f32 %v407_v26  ;;  %v355_v30 = vrot.slane %v354_v27, 1  ;;  %v358_v31 = vrot.slane %v357_v29, 4 }
 0x12c   :  { %v356_v32 = vmax.f32 %v354_v27, %v355_v30  ;;  %v359_v33 = vmax.f32 %v357_v29, %v358_v31 }
 0x12e   :  { %v400_v34 = vsub.f32 %v321_v8, %v356_v32  ;;  %v360_v35 = vrot.slane %v359_v33, 2 }
 0x130   :  { %v1351_v36 = vpop.eup %1089  ;;  %v409_v37 = vmul.f32 1.442695, %v400_v34  ;;  %v361_v38 = vmax.f32 %v359_v33, %v360_v35  ;;  %v327_v39 = vpop.f32.mrf.mxu3 }
 0x131   :  { %v423_v40 = vsel %vm342_vm1, %v1351_v36, 0.0  ;;  %v364_v41 = vsel %vm342_vm1, %v327_v39, -inf }
 0x132   :  { %v424_v42 = vrot.slane %v423_v40, 4  ;;  %1091 = vpow2.f32 %v409_v37  ;;  %v362_v43 = vrot.slane %v361_v38, 1  ;;  %v365_v44 = vrot.slane %v364_v41, 4 }
 0x134   :  { %v425_v9 = vadd.f32 %v424_v42, %v423_v40  ;;  %v363_v45 = vmax.f32 %v361_v38, %v362_v43  ;;  %v366_v46 = vmax.f32 %v364_v41, %v365_v44 }
 0x136   :  { %v426_v47 = vrot.slane %v425_v9, 2  ;;  %v401_v48 = vsub.f32 %v324_v28, %v363_v45  ;;  %v367_v49 = vrot.slane %v366_v46, 2 }
 0x138   :  { %v1358_v50 = vpop.eup %1091  ;;  %v427_v51 = vadd.f32 %v426_v47, %v425_v9  ;;  %v411_v52 = vmul.f32 1.442695, %v401_v48  ;;  %v368_v53 = vmax.f32 %v366_v46, %v367_v49  ;;  %v330_v54 = vpop.f32.mrf.mxu3 }
 0x139   :  { %v430_v55 = vsel %vm342_vm1, %v1358_v50, 0.0  ;;  %v371_v56 = vsel %vm342_vm1, %v330_v54, -inf }
 0x13a   :  { %v428_v57 = vrot.slane %v427_v51, 1  ;;  %v431_v58 = vrot.slane %v430_v55, 4  ;;  %1093 = vpow2.f32 %v411_v52  ;;  %v369_v10 = vrot.slane %v368_v53, 1 }
 0x13b   :  { %v372_v59 = vrot.slane %v371_v56, 4 }
 0x13c   :  { %v429_v60 = vadd.f32 %v428_v57, %v427_v51  ;;  %v432_v61 = vadd.f32 %v431_v58, %v430_v55  ;;  %v370_v62 = vmax.f32 %v368_v53, %v369_v10 }
 0x13d   :  { %v373_v63 = vmax.f32 %v371_v56, %v372_v59 }
 0x13e   :  { %1095 = vrcp.f32 %v429_v60  ;;  %v433_v0 = vrot.slane %v432_v61, 2  ;;  %v402_v1 = vsub.f32 %v327_v39, %v370_v62  ;;  %v488_v31 = vand.u32 2147483647, %v429_v60 }
 0x13f   :  { %v374_v2 = vrot.slane %v373_v63, 2  ;;  %v490_v35 = vand.u32 2147483648, %v429_v60  ;;  %vm484_vm3 = vweird.f32 %v429_v60 }
 0x140   :  { %v1365_v3 = vpop.eup %1093  ;;  %v434_v4 = vadd.f32 %v433_v0, %v432_v61  ;;  %v413_v5 = vmul.f32 1.442695, %v402_v1  ;;  %v333_v6 = vpop.f32.mrf.mxu3  ;;  %vm489_vm5 = vcmp.eq.f32.partialorder %v488_v31, 8.507059e+37 }
 0x141   :  { %v437_v7 = vsel %vm342_vm1, %v1365_v3, 0.0  ;;  %v375_v8 = vmax.f32 %v373_v63, %v374_v2  ;;  %v378_v11 = vsel %vm342_vm1, %v333_v6, -inf  ;;  %v491_v52 = vor.u32 1.1754944e-38, %v490_v35 }
 0x142   :  { %v435_v17 = vrot.slane %v434_v4, 1  ;;  %v438_v18 = vrot.slane %v437_v7, 4  ;;  %1097 = vpow2.f32 %v413_v5  ;;  %v379_v19 = vrot.slane %v378_v11, 4 }
 0x143   :  { %v376_v20 = vrot.slane %v375_v8, 1 }
 0x144   :  { %v1096_v21 = vpop.eup %1095  ;;  %v1372_v22 = vadd.f32 %v435_v17, %v434_v4  ;;  %v439_v23 = vadd.f32 %v438_v18, %v437_v7  ;;  %v380_v24 = vmax.f32 %v378_v11, %v379_v19 }
 0x145   :  { %v377_v25 = vmax.f32 %v375_v8, %v376_v20  ;;  %v480_v26 = vmul.f32 %v1096_v21, %v429_v60  ;;  %vm485_vm2 = vweird.f32 %v1096_v21 }
 0x146   :  { %1099 = vrcp.f32 %v1372_v22  ;;  %v440_v27 = vrot.slane %v439_v23, 2  ;;  %v381_v28 = vrot.slane %v380_v24, 2  ;;  %vm486_vm4 = vmor %vm484_vm3, %vm485_vm2  ;;  %v503_v58 = vand.u32 2147483647, %v1372_v22 }
 0x147   :  { %v403_v29 = vsub.f32 %v330_v54, %v377_v25  ;;  %v481_v30 = vsub.f32 1.0, %v480_v26  ;;  %v505_v10 = vand.u32 2147483648, %v1372_v22  ;;  %vm499_vm7 = vweird.f32 %v1372_v22 }
 0x148   :  { %v1375_v32 = vpop.eup %1097  ;;  %v441_v33 = vadd.f32 %v440_v27, %v439_v23  ;;  %v382_v34 = vmax.f32 %v380_v24, %v381_v28  ;;  %v1377_v12 = vpop.f32.mrf.mxu3  ;;  %vm504_vm9 = vcmp.eq.f32.partialorder %v503_v58, 8.507059e+37 }
 0x149   :  { %v444_v37 = vsel %vm342_vm1, %v1375_v32, 0.0  ;;  %v415_v38 = vmul.f32 1.442695, %v403_v29  ;;  %v385_v39 = vsel %vm342_vm1, %v1377_v12, -inf  ;;  %v482_v40 = vmul.f32 %v1096_v21, %v481_v30 }
 0x14a   :  { %v442_v41 = vrot.slane %v441_v33, 1  ;;  %v445_v42 = vrot.slane %v444_v37, 4  ;;  %v383_v43 = vrot.slane %v382_v34, 1  ;;  %v386_v44 = vrot.slane %v385_v39, 4 }
 0x14b   :  { %1101 = vpow2.f32 %v415_v38  ;;  %v483_v9 = vadd.f32 %v1096_v21, %v482_v40  ;;  %v506_v19 = vor.u32 1.1754944e-38, %v505_v10 }
 0x14c   :  { %v1100_v45 = vpop.eup %1099  ;;  %v1385_v46 = vadd.f32 %v442_v41, %v441_v33  ;;  %v446_v47 = vadd.f32 %v445_v42, %v444_v37  ;;  %v384_v48 = vmax.f32 %v382_v34, %v383_v43  ;;  %v387_v49 = vmax.f32 %v385_v39, %v386_v44 }
 0x14d   :  { %v487_v51 = vsel %vm486_vm4, %v1096_v21, %v483_v9  ;;  %v495_v53 = vmul.f32 %v1100_v45, %v1372_v22  ;;  %vm500_vm6 = vweird.f32 %v1100_v45 }
 0x14e   :  { %1103 = vrcp.f32 %v1385_v46  ;;  %v447_v54 = vrot.slane %v446_v47, 2  ;;  %v404_v13 = vsub.f32 %v333_v6, %v384_v48  ;;  %v388_v55 = vrot.slane %v387_v49, 2  ;;  %vm501_vm8 = vmor %vm499_vm7, %vm500_vm6 }
 0x14f   :  { %v492_v56 = vsel %vm489_vm5, %v491_v52, %v487_v51  ;;  %v496_v57 = vsub.f32 1.0, %v495_v53  ;;  %v518_v31 = vand.u32 2147483647, %v1385_v46  ;;  %v520_v33 = vand.u32 2147483648, %v1385_v46 }
 0x150   :  { %v448_v59 = vadd.f32 %v447_v54, %v446_v47  ;;  %v417_v60 = vmul.f32 1.442695, %v404_v13  ;;  %v389_v61 = vmax.f32 %v387_v49, %v388_v55  ;;  %v1392_v62 = vpop.f32.mrf.mxu3  ;;  %v493_v63 = vmul.f32 %v1351_v36, %v492_v56 }
 0x151   :  { %v1395_v0 = vpop.eup %1101  ;;  %v392_v1 = vsel %vm342_vm1, %v1392_v62, -inf  ;;  %v497_v2 = vmul.f32 %v1100_v45, %v496_v57  ;;  %vm514_vm11 = vweird.f32 %v1385_v46  ;;  %vm519_vm13 = vcmp.eq.f32.partialorder %v518_v31, 8.507059e+37 }
 0x152   :  { %v449_v4 = vrot.slane %v448_v59, 1  ;;  %v451_v5 = vsel %vm342_vm1, %v1395_v0, 0.0  ;;  %1105 = vpow2.f32 %v417_v60  ;;  %v390_v6 = vrot.slane %v389_v61, 1  ;;  %1049 = vmatmul.msk.f32.vlgmr.msrb.gmra.mxu0 %vm342_vm1, %v493_v63 }
 0x153   :  { %v452_v7 = vrot.slane %v451_v5, 4  ;;  %v393_v36 = vrot.slane %v392_v1, 4  ;;  %v498_v8 = vadd.f32 %v1100_v45, %v497_v2  ;;  %v521_v43 = vor.u32 1.1754944e-38, %v520_v33 }
 0x154   :  { %v1104_v11 = vpop.eup %1103  ;;  %v1405_v17 = vadd.f32 %v449_v4, %v448_v59  ;;  %v391_v18 = vmax.f32 %v389_v61, %v390_v6 }
 0x155   :  { %v453_v20 = vadd.f32 %v452_v7, %v451_v5  ;;  %v394_v21 = vmax.f32 %v392_v1, %v393_v36  ;;  %v502_v23 = vsel %vm501_vm8, %v1100_v45, %v498_v8  ;;  %v510_v24 = vmul.f32 %v1104_v11, %v1385_v46 }
 0x156   :  { %1107 = vrcp.f32 %v1405_v17  ;;  %v405_v14 = vsub.f32 %v1377_v12, %v391_v18  ;;  %v507_v25 = vsel %vm504_vm9, %v506_v19, %v502_v23  ;;  %vm515_vm10 = vweird.f32 %v1104_v11 }
 0x157   :  { %v454_v26 = vrot.slane %v453_v20, 2  ;;  %v395_v27 = vrot.slane %v394_v21, 2  ;;  %v508_v22 = vmul.f32 %v1358_v50, %v507_v25  ;;  %v511_v28 = vsub.f32 1.0, %v510_v24  ;;  %vm516_vm12 = vmor %vm514_vm11, %vm515_vm10 }
 0x158   :  { %v1411_v29 = vpop.eup %1105  ;;  %v419_v30 = vmul.f32 1.442695, %v405_v14  ;;  %v533_v54 = vand.u32 2147483647, %v1405_v17  ;;  %v535_v13 = vand.u32 2147483648, %v1405_v17  ;;  %vm529_vm15 = vweird.f32 %v1405_v17 }
 0x159   :  { %v455_v34 = vadd.f32 %v454_v26, %v453_v20  ;;  %v458_v35 = vsel %vm342_vm1, %v1411_v29, 0.0  ;;  %v396_v37 = vmax.f32 %v394_v21, %v395_v27  ;;  %v512_v12 = vmul.f32 %v1104_v11, %v511_v28 }
 0x15a   :  { %v459_v38 = vrot.slane %v458_v35, 4  ;;  %1109 = vpow2.f32 %v419_v30  ;;  %1050 = vmatmul.msk.f32.gmra.mxu0 %vm342_vm1, %v508_v22  ;;  %v536_v61 = vor.u32 1.1754944e-38, %v535_v13  ;;  %vm534_vm3 = vcmp.eq.f32.partialorder %v533_v54, 8.507059e+37 }
 0x15b   :  { %v456_v50 = vrot.slane %v455_v34, 1  ;;  %v397_v39 = vrot.slane %v396_v37, 1  ;;  %v513_v40 = vadd.f32 %v1104_v11, %v512_v12 }
 0x15c   :  { %v1108_v41 = vpop.eup %1107  ;;  %v460_v42 = vadd.f32 %v459_v38, %v458_v35 }
 0x15d   :  { %v457_v44 = vadd.f32 %v456_v50, %v455_v34  ;;  %v398_v9 = vmax.f32 %v396_v37, %v397_v39  ;;  %v517_v45 = vsel %vm516_vm12, %v1104_v11, %v513_v40  ;;  %v525_v47 = vmul.f32 %v1108_v41, %v1405_v17 }
 0x15e   :  { %v461_v48 = vrot.slane %v460_v42, 2  ;;  %v522_v49 = vsel %vm519_vm13, %v521_v43, %v517_v45  ;;  %vm530_vm14 = vweird.f32 %v1108_v41 }
 0x15f   :  { %1111 = vrcp.f32 %v457_v44  ;;  %v406_v15 = vsub.f32 %v1392_v62, %v398_v9  ;;  %v523_v51 = vmul.f32 %v1365_v3, %v522_v49  ;;  %v526_v52 = vsub.f32 1.0, %v525_v47  ;;  %vm531_vm2 = vmor %vm529_vm15, %vm530_vm14 }
 0x160   :  { %v1425_v46 = vpop.eup %1109  ;;  %v462_v53 = vadd.f32 %v461_v48, %v460_v42  ;;  %v548_v36 = vand.u32 2147483647, %v457_v44  ;;  %v550_v8 = vand.u32 2147483648, %v457_v44  ;;  %vm544_vm5 = vweird.f32 %v457_v44 }
 0x161   :  { %v465_v55 = vsel %vm342_vm1, %v1425_v46, 0.0  ;;  %v421_v56 = vmul.f32 1.442695, %v406_v15  ;;  %v527_v57 = vmul.f32 %v1108_v41, %v526_v52 }
 0x162   :  { %v463_v58 = vrot.slane %v462_v53, 1  ;;  %v466_v10 = vrot.slane %v465_v55, 4  ;;  %1051 = vmatmul.msk.f32.gmra.mxu0 %vm342_vm1, %v523_v51  ;;  %v551_v24 = vor.u32 1.1754944e-38, %v550_v8  ;;  %vm549_vm7 = vcmp.eq.f32.partialorder %v548_v36, 8.507059e+37 }
 0x163   :  { %1113 = vpow2.f32 %v421_v56  ;;  %v528_v3 = vadd.f32 %v1108_v41, %v527_v57 }
 0x164   :  { %v464_v59 = vadd.f32 %v463_v58, %v462_v53  ;;  %v467_v60 = vadd.f32 %v466_v10, %v465_v55 }
 0x165   :  { %v1112_v62 = vpop.eup %1111  ;;  %v532_v63 = vsel %vm531_vm2, %v1108_v41, %v528_v3  ;;  %v221_v3 = vpop.f32.mrf.mxu2 }
 0x166   :  { %1115 = vrcp.f32 %v464_v59  ;;  %v468_v1 = vrot.slane %v467_v60, 2  ;;  %v537_v2 = vsel %vm534_vm3, %v536_v61, %v532_v63  ;;  %v540_v4 = vmul.f32 %v1112_v62, %v457_v44  ;;  %v742_v63 = vld [vmem:[%s1637_s7 + $0x10] sm:$0xff] }
 0x167   :  { %v538_v5 = vmul.f32 %v1375_v32, %v537_v2  ;;  %vm545_vm4 = vweird.f32 %v1112_v62  ;;  %v565_v30 = vand.u32 2147483648, %v464_v59  ;;  %v563_v34 = vand.u32 2147483647, %v464_v59 }
 0x168   :  { %v469_v6 = vadd.f32 %v468_v1, %v467_v60  ;;  %v541_v7 = vsub.f32 1.0, %v540_v4  ;;  %vm546_vm6 = vmor %vm544_vm5, %vm545_vm4  ;;  %vm559_vm9 = vweird.f32 %v464_v59 }
 0x169   :  { %v1436_v16 = vpop.eup %1113  ;;  %v566_v38 = vor.u32 1.1754944e-38, %v565_v30  ;;  %vm564_vm11 = vcmp.eq.f32.partialorder %v563_v34, 8.507059e+37 }
 0x16a   :  { %v470_v11 = vrot.slane %v469_v6, 1  ;;  %v472_v17 = vsel %vm342_vm1, %v1436_v16, 0.0  ;;  %1052 = vmatmul.msk.f32.gmra.mxu0 %vm342_vm1, %v538_v5  ;;  %v542_v18 = vmul.f32 %v1112_v62, %v541_v7  ;;  %v741_v5 = vld [vmem:[%s1637_s7 + $0x8] sm:$0xff]  ;;  %v1085_v7 = vld [vmem:[%s1632_s6 + $0x2] ss:$0 sm:$0xff] }
 0x16b   :  { %v473_v19 = vrot.slane %v472_v17, 4 }
 0x16c   :  { %v1116_v20 = vpop.eup %1115  ;;  %v471_v21 = vadd.f32 %v470_v11, %v469_v6  ;;  %v543_v23 = vadd.f32 %v1112_v62, %v542_v18 }
 0x16d   :  { %v474_v32 = vadd.f32 %v473_v19, %v472_v17  ;;  %v555_v14 = vmul.f32 %v1116_v20, %v464_v59  ;;  %vm560_vm8 = vweird.f32 %v1116_v20  ;;  %v743_v59 = vld [vmem:[%s1637_s7 + $0x18] sm:$0xff]  ;;  %v222_v17 = vadd.f32 %v1085_v7, %v221_v3 }
 0x16e   :  { %1117 = vrcp.f32 %v471_v21  ;;  %v547_v25 = vsel %vm546_vm6, %v1112_v62, %v543_v23  ;;  %vm561_vm10 = vmor %vm559_vm9, %vm560_vm8  ;;  %v580_v43 = vand.u32 2147483648, %v471_v21  ;;  %v578_v9 = vand.u32 2147483647, %v471_v21  ;;  %1057 = vmatpush.xpose.msk.msrb.mxu3 %vm67_vm0, %v743_v59 }
 0x16f   :  { %v475_v26 = vrot.slane %v474_v32, 2  ;;  %v552_v27 = vsel %vm549_vm7, %v551_v24, %v547_v25  ;;  %v556_v22 = vsub.f32 1.0, %v555_v14  ;;  %vm574_vm13 = vweird.f32 %v471_v21  ;;  %v740_v25 = vld [vmem:[%s1637_s7] sm:$0xff]  ;;  %s1131_s7 = smov 96  }
 0x170   :  { %v553_v28 = vmul.f32 %v1395_v0, %v552_v27  ;;  %v581_v47 = vor.u32 1.1754944e-38, %v580_v43  ;;  %vm579_vm15 = vcmp.eq.f32.partialorder %v578_v9, 8.507059e+37  ;;  %vm758_vm6 = vcmask 1042434  }
 0x171   :  { %v476_v31 = vadd.f32 %v475_v26, %v474_v32  ;;  %v557_v33 = vmul.f32 %v1116_v20, %v556_v22  ;;  %vm760_vm7 = vcmask 1043459   ;;  %vm762_vm8 = vcmask 1044484  }
 0x172   :  { %1053 = vmatmul.msk.f32.gmra.mxu0 %vm342_vm1, %v553_v28  ;;  %1058 = vmatpush.xpose.msk.msrb.mxu3 %vm67_vm0, %v742_v63  ;;  %vm764_vm9 = vcmask 1045509  }
 0x173   :  { %v477_v35 = vrot.slane %v476_v31, 1  ;;  %v558_v37 = vadd.f32 %v1116_v20, %v557_v33 }
 0x174   :  { %v1118_v12 = vpop.eup %1117 }
 0x175   :  { %v478_v50 = vadd.f32 %v477_v35, %v476_v31  ;;  %v562_v39 = vsel %vm561_vm10, %v1116_v20, %v558_v37  ;;  %v570_v40 = vmul.f32 %v1118_v12, %v471_v21  ;;  %vm575_vm12 = vweird.f32 %v1118_v12 }
 0x176   :  { %v567_v41 = vsel %vm564_vm11, %v566_v38, %v562_v39  ;;  %vm576_vm14 = vmor %vm574_vm13, %vm575_vm12  ;;  %1059 = vmatpush.xpose.msk.msrb.mxu3 %vm67_vm0, %v741_v5  ;;  %vm766_vm10 = vcmask 1046534   ;;  %vm768_vm11 = vcmask 1047559   ;;  %vm811_vm12 = vcmask 523264  }
 0x177   :  { %1119 = vrcp.f32 %v478_v50  ;;  %v568_v0 = vmul.f32 %v1411_v29, %v567_v41  ;;  %v571_v42 = vsub.f32 1.0, %v570_v40  ;;  %v595_v29 = vand.u32 2147483648, %v478_v50 }
 0x178   :  { %v593_v13 = vand.u32 2147483647, %v478_v50  ;;  %vm589_vm3 = vweird.f32 %v478_v50  ;;  %vm813_vm13 = vcmask 785408  }
 0x179   :  { %v572_v44 = vmul.f32 %v1118_v12, %v571_v42  ;;  %v596_v56 = vor.u32 1.1754944e-38, %v595_v29 }
 0x17a   :  { %1054 = vmatmul.msk.f32.gmra.mxu0 %vm342_vm1, %v568_v0  ;;  %vm594_vm5 = vcmp.eq.f32.partialorder %v593_v13, 8.507059e+37  ;;  %1060 = vmatpush.xpose.msk.msrb.mxu3 %vm67_vm0, %v740_v25 }
 0x17b   :  { %v573_v45 = vadd.f32 %v1118_v12, %v572_v44 }
 0x17d   :  { %v1120_v48 = vpop.eup %1119  ;;  %v577_v49 = vsel %vm576_vm14, %v1118_v12, %v573_v45 }
 0x17e   :  { %v582_v15 = vsel %vm579_vm15, %v581_v47, %v577_v49  ;;  %v585_v51 = vmul.f32 %v1120_v48, %v478_v50  ;;  %vm590_vm2 = vweird.f32 %v1120_v48 }
 0x17f   :  { %v583_v52 = vmul.f32 %v1425_v46, %v582_v15  ;;  %vm591_vm4 = vmor %vm589_vm3, %vm590_vm2  ;;  %v224_v46 = vpop.f32.mrf.mxu2 }
 0x180   :  { %v586_v53 = vsub.f32 1.0, %v585_v51  ;;  %v225_v36 = vadd.f32 %v1085_v7, %v224_v46 }
 0x182   :  { %1055 = vmatmul.msk.f32.gmra.mxu0 %vm342_vm1, %v583_v52  ;;  %v587_v54 = vmul.f32 %v1120_v48, %v586_v53 }
 0x184   :  { %v588_v55 = vadd.f32 %v1120_v48, %v587_v54 }
 0x186   :  { %v592_v57 = vsel %vm591_vm4, %v1120_v48, %v588_v55 }
 0x187   :  { %v597_v58 = vsel %vm594_vm5, %v596_v56, %v592_v57  ;;  %v227_v61 = vpop.f32.mrf.mxu2 }
 0x188   :  { %v598_v10 = vmul.f32 %v1436_v16, %v597_v58  ;;  %v228_v8 = vadd.f32 %v1085_v7, %v227_v61 }
 0x18a   :  { %1056 = vmatmul.msk.f32.gmra.mxu0 %vm342_vm1, %v598_v10  ;;  %vm756_vm1 = vcmask 1041409  }
 0x18f   :  { %v230_v1 = vpop.f32.mrf.mxu2 }
 0x190   :  { %v231_v18 = vadd.f32 %v1085_v7, %v230_v1 }
 0x197   :  { %v233_v4 = vpop.f32.mrf.mxu2 }
 0x198   :  { %v234_v19 = vadd.f32 %v1085_v7, %v233_v4 }
 0x19f   :  { %v236_v16 = vpop.f32.mrf.mxu2 }
 0x1a0   :  { %v237_v24 = vadd.f32 %v1085_v7, %v236_v16 }
 0x1a7   :  { %v239_v28 = vpop.f32.mrf.mxu2 }
 0x1a8   :  { %v240_v40 = vadd.f32 %v1085_v7, %v239_v28 }
 0x1af   :  { %v242_v15 = vpop.f32.mrf.mxu2 }
 0x1b0   :  { %v243_v55 = vadd.f32 %v1085_v7, %v242_v15  ;;  %v818_v15 = vld [vmem:[%s1638_s9 + $0x18] sm:$0xff] }
 0x1cf   :  { %v652_v60 = vpop.f32.mrf.mxu0 }
 0x1d0   :  { %v676_v23 = vmul.f32 %v652_v60, %v222_v17 }
 0x1d2   :  { %v684_v30 = vsel %vm67_vm0, %v676_v23, 0.0 }
 0x1d3   :  { %v685_v38 = vrot.slane %v684_v30, 4 }
 0x1d5   :  { %v686_v43 = vadd.f32 %v685_v38, %v684_v30  ;;  %v828_v38 = vld [vmem:[%s1638_s9 + $0x68] sm:$0xff] }
 0x1d7   :  { %v655_v62 = vpop.f32.mrf.mxu0  ;;  %v687_v53 = vrot.slane %v686_v43, 2 }
 0x1d8   :  { %v677_v20 = vmul.f32 %v655_v62, %v225_v36 }
 0x1d9   :  { %v688_v3 = vadd.f32 %v687_v53, %v686_v43  ;;  %v824_v43 = vld [vmem:[%s1638_s9 + $0x48] sm:$0xff]  ;;  %v815_v53 = vld [vmem:[%s1638_s9] sm:$0xff] }
 0x1da   :  { %v691_v26 = vsel %vm67_vm0, %v677_v20, 0.0 }
 0x1db   :  { %v692_v34 = vrot.slane %v691_v26, 4 }
 0x1dd   :  { %v693_v41 = vadd.f32 %v692_v34, %v691_v26 }
 0x1df   :  { %v658_v2 = vpop.f32.mrf.mxu0  ;;  %v694_v48 = vrot.slane %v693_v41, 2 }
 0x1e0   :  { %v678_v21 = vmul.f32 %v658_v2, %v228_v8 }
 0x1e1   :  { %v695_v56 = vadd.f32 %v694_v48, %v693_v41  ;;  %v825_v41 = vld [vmem:[%s1638_s9 + $0x50] sm:$0xff]  ;;  %v820_v48 = vld [vmem:[%s1638_s9 + $0x28] sm:$0xff] }
 0x1e2   :  { %v698_v27 = vsel %vm67_vm0, %v678_v21, 0.0 }
 0x1e3   :  { %v699_v37 = vrot.slane %v698_v27, 4  ;;  %v696_v63 = vrot.slane %v695_v56, 1 }
 0x1e5   :  { %v700_v42 = vadd.f32 %v699_v37, %v698_v27  ;;  %v697_v8 = vadd.f32 %v696_v63, %v695_v56  ;;  %v830_v37 = vld [vmem:[%s1638_s9 + $0x78] sm:$0xff] }
 0x1e6   :  { %835 = vmatpush.xpose.msrb.mxu1 %v830_v37  ;;  %v907_v37 = vld [vmem:[%s1642_s11 + $0x18] sm:$0xff] }
 0x1e7   :  { %v661_v6 = vpop.f32.mrf.mxu0  ;;  %v701_v51 = vrot.slane %v700_v42, 2 }
 0x1e8   :  { %v679_v32 = vmul.f32 %v661_v6, %v231_v18  ;;  %v689_v6 = vrot.slane %v688_v3, 1 }
 0x1e9   :  { %v702_v10 = vadd.f32 %v701_v51, %v700_v42  ;;  %v817_v51 = vld [vmem:[%s1638_s9 + $0x10] sm:$0xff] }
 0x1ea   :  { %v705_v31 = vsel %vm67_vm0, %v679_v32, 0.0  ;;  %v690_v20 = vadd.f32 %v689_v6, %v688_v3 }
 0x1eb   :  { %v706_v50 = vrot.slane %v705_v31, 4  ;;  %v703_v2 = vrot.slane %v702_v10, 1 }
 0x1ed   :  { %v707_v44 = vadd.f32 %v706_v50, %v705_v31  ;;  %v704_v18 = vadd.f32 %v703_v2, %v702_v10  ;;  %v827_v50 = vld [vmem:[%s1638_s9 + $0x60] sm:$0xff] }
 0x1ef   :  { %v664_v11 = vpop.f32.mrf.mxu0  ;;  %v708_v29 = vrot.slane %v707_v44, 2 }
 0x1f0   :  { %v680_v14 = vmul.f32 %v664_v11, %v234_v19 }
 0x1f1   :  { %v709_v46 = vadd.f32 %v708_v29, %v707_v44  ;;  %v823_v44 = vld [vmem:[%s1638_s9 + $0x40] sm:$0xff] }
 0x1f2   :  { %v712_v35 = vsel %vm67_vm0, %v680_v14, 0.0 }
 0x1f3   :  { %v713_v39 = vrot.slane %v712_v35, 4  ;;  %v710_v16 = vrot.slane %v709_v46, 1 }
 0x1f5   :  { %v714_v45 = vadd.f32 %v713_v39, %v712_v35  ;;  %v711_v21 = vadd.f32 %v710_v16, %v709_v46  ;;  %v826_v39 = vld [vmem:[%s1638_s9 + $0x58] sm:$0xff]  ;;  %v48_v46 = vld [vmem:[%s1641_s2] sm:$0xff] }
 0x1f7   :  { %v667_v22 = vpop.f32.mrf.mxu0  ;;  %v715_v13 = vrot.slane %v714_v45, 2 }
 0x1f8   :  { %v681_v33 = vmul.f32 %v667_v22, %v237_v24  ;;  %v757_v24 = vsel %vm756_vm1, %v697_v8, %v690_v20 }
 0x1f9   :  { %v716_v61 = vadd.f32 %v715_v13, %v714_v45  ;;  %v759_v26 = vsel %vm758_vm6, %v704_v18, %v757_v24  ;;  %v1129_v45 = vld [vmem:[%s1633_s1] sm:$0xff]  ;;  %v917_v24 = vld [vmem:[%s1642_s11 + $0x68] sm:$0xff] }
 0x1fa   :  { %v719_v12 = vsel %vm67_vm0, %v681_v33, 0.0  ;;  %v761_v22 = vsel %vm760_vm7, %v711_v21, %v759_v26  ;;  %v914_v26 = vld [vmem:[%s1642_s11 + $0x50] sm:$0xff] }
 0x1fb   :  { %v720_v0 = vrot.slane %v719_v12, 4  ;;  %v717_v7 = vrot.slane %v716_v61, 1 }
 0x1fd   :  { %v721_v49 = vadd.f32 %v720_v0, %v719_v12  ;;  %v718_v32 = vadd.f32 %v717_v7, %v716_v61  ;;  %v829_v12 = vld [vmem:[%s1638_s9 + $0x70] sm:$0xff] }
 0x1fe   :  { %836 = vmatpush.xpose.msrb.mxu1 %v829_v12  ;;  %v906_v12 = vld [vmem:[%s1642_s11 + $0x10] sm:$0xff] }
 0x1ff   :  { %v670_v9 = vpop.f32.mrf.mxu0  ;;  %v722_v57 = vrot.slane %v721_v49, 2  ;;  %v763_v30 = vsel %vm762_vm8, %v718_v32, %v761_v22  ;;  %v918_v32 = vld [vmem:[%s1642_s11 + $0x70] sm:$0xff]  ;;  %v912_v22 = vld [vmem:[%s1642_s11 + $0x40] sm:$0xff] }
 0x200   :  { %v682_v47 = vmul.f32 %v670_v9, %v240_v40  ;;  %v1086_v40 = vld [vmem:[%s1636_s8] ss:$0 sm:$0xff]  ;;  %v822_v9 = vld [vmem:[%s1638_s9 + $0x38] sm:$0xff] }
 0x201   :  { %v723_v1 = vadd.f32 %v722_v57, %v721_v49  ;;  %v819_v49 = vld [vmem:[%s1638_s9 + $0x20] sm:$0xff] }
 0x202   :  { %v726_v52 = vsel %vm67_vm0, %v682_v47, 0.0  ;;  %837 = vmatpush.xpose.msrb.mxu1 %v828_v38  ;;  %v821_v47 = vld [vmem:[%s1638_s9 + $0x30] sm:$0xff]  ;;  %v1087_v57 = vld [vmem:[%s1639_s10] ss:$0 sm:$0xff]  ;;  %v905_v38 = vld [vmem:[%s1642_s11 + $0x8] sm:$0xff] }
 0x203   :  { %v727_v54 = vrot.slane %v726_v52, 4  ;;  %v724_v11 = vrot.slane %v723_v1, 1 }
 0x205   :  { %v728_v58 = vadd.f32 %v727_v54, %v726_v52  ;;  %v725_v14 = vadd.f32 %v724_v11, %v723_v1  ;;  %v816_v52 = vld [vmem:[%s1638_s9 + $0x8] sm:$0xff]  ;;  %v46_v54 = vld [vmem:[%s1640_s0] sm:$0xff] }
 0x206   :  { %838 = vmatpush.xpose.msrb.mxu1 %v827_v50  ;;  %v904_v50 = vld [vmem:[%s1642_s11] sm:$0xff] }
 0x207   :  { %v729_v59 = vrot.slane %v728_v58, 2  ;;  %v673_v60 = vpop.f32.mrf.mxu0  ;;  %v765_v33 = vsel %vm764_vm9, %v725_v14, %v763_v30  ;;  %v916_v14 = vld [vmem:[%s1642_s11 + $0x60] sm:$0xff] }
 0x208   :  { %v683_v62 = vmul.f32 %v673_v60, %v243_v55 }
 0x209   :  { %v730_v4 = vadd.f32 %v729_v59, %v728_v58 }
 0x20a   :  { %v733_v5 = vsel %vm67_vm0, %v683_v62, 0.0  ;;  %839 = vmatpush.xpose.msrb.mxu1 %v826_v39 }
 0x20b   :  { %v734_v36 = vrot.slane %v733_v5, 4  ;;  %v731_v19 = vrot.slane %v730_v4, 1 }
 0x20d   :  { %v735_v17 = vadd.f32 %v734_v36, %v733_v5  ;;  %v732_v27 = vadd.f32 %v731_v19, %v730_v4 }
 0x20e   :  { %840 = vmatpush.xpose.msrb.mxu1 %v825_v41 }
 0x20f   :  { %v736_v23 = vrot.slane %v735_v17, 2  ;;  %v767_v34 = vsel %vm766_vm10, %v732_v27, %v765_v33  ;;  %v913_v27 = vld [vmem:[%s1642_s11 + $0x48] sm:$0xff]  ;;  %v910_v33 = vld [vmem:[%s1642_s11 + $0x30] sm:$0xff] }
 0x211   :  { %v737_v25 = vadd.f32 %v736_v23, %v735_v17  ;;  %v919_v23 = vld [vmem:[%s1642_s11 + $0x78] sm:$0xff] }
 0x212   :  { %841 = vmatpush.xpose.msrb.mxu1 %v824_v43  ;;  %1063 = vmatpush.xpose.msk.msrb.mxu2 %vm811_vm12, %v919_v23 }
 0x213   :  { %v738_v28 = vrot.slane %v737_v25, 1 }
 0x215   :  { %v739_v31 = vadd.f32 %v738_v28, %v737_v25  ;;  %v915_v25 = vld [vmem:[%s1642_s11 + $0x58] sm:$0xff] }
 0x216   :  { %842 = vmatpush.xpose.msrb.mxu1 %v823_v44  ;;  %1064 = vmatpush.xpose.msk.msrb.mxu2 %vm811_vm12, %v918_v32  ;;  %v1088_v44 = vld [vmem:[%s1643_s12] ss:$0 sm:$0xff] }
 0x217   :  { %v769_v35 = vsel %vm768_vm11, %v739_v31, %v767_v34  ;;  %v911_v31 = vld [vmem:[%s1642_s11 + $0x38] sm:$0xff]  ;;  %v909_v34 = vld [vmem:[%s1642_s11 + $0x28] sm:$0xff] }
 0x218   :  { %1061 = vmatmul.msk.f32.vlgmr.msrb.gmra.mxu3 %vm67_vm0, %v769_v35  ;;  %v908_v35 = vld [vmem:[%s1642_s11 + $0x20] sm:$0xff] }
 0x21a   :  { %843 = vmatpush.xpose.msrb.mxu1 %v822_v9  ;;  %1065 = vmatpush.xpose.msk.msrb.mxu2 %vm811_vm12, %v917_v24 }
 0x21e   :  { %844 = vmatpush.xpose.msrb.mxu1 %v821_v47  ;;  %1066 = vmatpush.xpose.msk.msrb.mxu2 %vm811_vm12, %v916_v14 }
 0x222   :  { %845 = vmatpush.xpose.msrb.mxu1 %v820_v48  ;;  %1067 = vmatpush.xpose.msk.msrb.mxu2 %vm811_vm12, %v915_v25 }
 0x226   :  { %846 = vmatpush.xpose.msrb.mxu1 %v819_v49  ;;  %1068 = vmatpush.xpose.msk.msrb.mxu2 %vm811_vm12, %v914_v26 }
 0x22a   :  { %847 = vmatpush.xpose.msrb.mxu1 %v818_v15  ;;  %1069 = vmatpush.xpose.msk.msrb.mxu2 %vm811_vm12, %v913_v27 }
 0x22e   :  { %848 = vmatpush.xpose.msrb.mxu1 %v817_v51  ;;  %1070 = vmatpush.xpose.msk.msrb.mxu2 %vm811_vm12, %v912_v22 }
 0x232   :  { %849 = vmatpush.xpose.msrb.mxu1 %v816_v52  ;;  %1071 = vmatpush.xpose.msk.msrb.mxu2 %vm811_vm12, %v911_v31 }
 0x236   :  { %850 = vmatpush.xpose.msrb.mxu1 %v815_v53  ;;  %1072 = vmatpush.xpose.msk.msrb.mxu2 %vm811_vm12, %v910_v33 }
 0x23a   :  { %1073 = vmatpush.xpose.msk.msrb.mxu2 %vm811_vm12, %v909_v34 }
 0x23e   :  { %1074 = vmatpush.xpose.msk.msrb.mxu2 %vm811_vm12, %v908_v35 }
 0x242   :  { %1075 = vmatpush.xpose.msk.msrb.mxu2 %vm811_vm12, %v907_v37 }
 0x246   :  { %1076 = vmatpush.xpose.msk.msrb.mxu2 %vm811_vm12, %v906_v12 }
 0x24a   :  { %1077 = vmatpush.xpose.msk.msrb.mxu2 %vm811_vm12, %v905_v38 }
 0x24e   :  { %1078 = vmatpush.xpose.msk.msrb.mxu2 %vm811_vm12, %v904_v50 }
 0x29b   :  { %v801_v0 = vpop.f32.mrf.mxu3 }
 0x29c   :  { %v802_v42 = vadd.f32 %v1086_v40, %v801_v0 }
 0x29e   :  { %805 = vrot.lane.b32.xlu0 %v802_v42, %s1130_s3 }
 0x2a6   :  { %808 = vrot.lane.b32.xlu0 %v1129_v45, %s1131_s7 }
 0x310   :  { %v1532_v29 = vpop.permute.xlu0 %805 }
 0x311   :  { %v812_v13 = vsel %vm811_vm12, %v46_v54, %v1532_v29 }
 0x318   :  { %v809_v55 = vpop.permute.xlu0 %808 }
 0x319   :  { %v814_v56 = vsel %vm813_vm13, %v812_v13, %v809_v55 }
 0x31a   :  { %851 = vmatmul.f32.vlgmr.msrb.gmra.mxu1 %v814_v56 }
 0x397   :  { %v852_v58 = vpop.f32.mrf.mxu1 }
 0x398   :  { %v853_v10 = vadd.f32 %v1087_v57, %v852_v58 }
 0x39a   :  { %1121 = vtanh.f32 %v853_v10  ;;  %v1062_v59 = vmul.f32 -1.442695, %v853_v10 }
 0x39c   :  { %1123 = vpow2.f32 %v1062_v59 }
 0x3a0   :  { %v1122_v3 = vpop.eup %1121 }
 0x3a1   :  { %881 = vrot.lane.b32.xlu1 %v1122_v3, %s1130_s3 }
 0x3a2   :  { %v1124_v60 = vpop.eup %1123 }
 0x3a3   :  { %v858_v61 = vadd.f32 1.0, %v1124_v60 }
 0x3a5   :  { %1125 = vrcp.f32 %v858_v61  ;;  %v870_v5 = vand.u32 2147483648, %v858_v61  ;;  %vm864_vm15 = vweird.f32 %v858_v61  ;;  %v868_v6 = vand.u32 2147483647, %v858_v61 }
 0x3a7   :  { %v871_v36 = vor.u32 1.1754944e-38, %v870_v5  ;;  %vm869_vm3 = vcmp.eq.f32.partialorder %v868_v6, 8.507059e+37 }
 0x3a9   :  { %876 = vrot.lane.b32.xlu1 %v48_v46, %s1132_s23 }
 0x3ab   :  { %v1126_v62 = vpop.eup %1125 }
 0x3ac   :  { %v860_v63 = vmul.f32 %v1126_v62, %v858_v61  ;;  %vm865_vm14 = vweird.f32 %v1126_v62 }
 0x3ad   :  { %vm866_vm2 = vmor %vm864_vm15, %vm865_vm14 }
 0x3ae   :  { %v861_v1 = vsub.f32 1.0, %v860_v63 }
 0x3b0   :  { %v862_v2 = vmul.f32 %v1126_v62, %v861_v1 }
 0x3b1   :  { %900 = vrot.lane.b32.xlu1 %v802_v42, %s1132_s23 }
 0x3b2   :  { %v863_v4 = vadd.f32 %v1126_v62, %v862_v2 }
 0x3b4   :  { %v867_v16 = vsel %vm866_vm2, %v1126_v62, %v863_v4 }
 0x3b5   :  { %v872_v8 = vsel %vm869_vm3, %v871_v36, %v867_v16 }
 0x413   :  { %v882_v7 = vpop.permute.xlu1 %881 }
 0x414   :  { %v884_v11 = vmul.f32 %v882_v7, %v872_v8 }
 0x416   :  { %886 = vrot.lane.b32.xlu2 %v884_v11, %s1132_s23 }
 0x41b   :  { %v877_v17 = vpop.permute.xlu1 %876 }
 0x41c   :  { %v879_v18 = vmul.f32 %v877_v17, %v872_v8 }
 0x423   :  { %v901_v39 = vpop.permute.xlu1 %900 }
 0x470   :  { %v887_v19 = vpop.permute.xlu2 %886 }
 0x471   :  { %v889_v20 = vadd.f32 %v887_v19, %v879_v18 }
 0x473   :  { %1127 = vtanh.f32 %v889_v20 }
 0x479   :  { %v1128_v21 = vpop.eup %1127 }
 0x47a   :  { %892 = vrot.lane.b32.xlu2 %v1128_v21, %s1130_s3 }
 0x4d4   :  { %v893_v28 = vpop.permute.xlu2 %892 }
 0x4d5   :  { %v895_v30 = vmul.f32 %v893_v28, %v872_v8 }
 0x4d7   :  { %897 = vrot.lane.b32.xlu0 %v895_v30, %s1132_s23 }
 0x549   :  { %v898_v40 = vpop.permute.xlu0 %897 }
 0x54a   :  { %v903_v41 = vsel %vm67_vm0, %v898_v40, %v901_v39  ;;  %v996_v0 = vsel %vm67_vm0, %v898_v40, %v889_v20 }
 0x54b   :  { %v997_v42 = vsel %vm811_vm12, %v996_v0, %v1532_v29  ;;  %1079 = vmatmul.msk.f32.vlgmr.msrb.gmra.mxu2 %vm811_vm12, %v903_v41 }
 0x54c   :  { %v998_v43 = vsel %vm813_vm13, %v997_v42, 0.0 }
 0x54d   :  { %999 = vst [vmem:[%s1644_s14] sm:$0xff] %v998_v43 }
 0x5ce   :  { %v992_v9 = vpop.f32.mrf.mxu2 }
 0x5cf   :  { %v993_v45 = vadd.f32 %v1088_v44, %v992_v9 }
 0x5d1   :  { %995 = vst [vmem:[%s1645_s13] sm:$0xff] %v993_v45 }

</bundles_post_ra>
